<compile_context>
chip_gen: v7x
topology: tpu7x:2x2x1
jax: 0.10.0
libtpu: 0.0.40
codegen_flags: <defaults>
</compile_context>

<pallas_src>
import functools

import jax
import jax.numpy as jnp
from jax.experimental import pallas as pl
from jax.experimental.pallas import tpu as pltpu

_TILE_BYTES = 6 * 1024 * 1024      # target logits bytes per tile
_VMEM_BUDGET = 30 * 1024 * 1024    # estimated live-VMEM budget for the heuristic
_VMEM_LIMIT = 48 * 1024 * 1024     # scoped VMEM limit (<= v7x physical 64 MiB)


def _round_down(x, m):
    return (x // m) * m


def _neg_grad_plus_kernel(logits_ref, targets_ref, out_ref, *, negative_classes):
    logits = logits_ref[...]                         # (TB, C) native dtype
    tgt = targets_ref[...]                           # (TB, 1) int32
    _, c = logits.shape

    # (1, C) lane iota broadcast against (TB, 1) targets -> one-hot mask.
    col = jax.lax.broadcasted_iota(jnp.int32, (1, c), 1)
    onehot = col == tgt                               # (TB, C) bool

    # Row max and target-logit gather on the raw logits (exact picks).
    m = jnp.max(logits, axis=-1, keepdims=True)                       # (TB, 1)
    tgt_logit = jnp.sum(
        jnp.where(onehot, logits, jnp.zeros((), logits.dtype)),
        axis=-1, keepdims=True)                                        # (TB, 1)

    # Numerically stable CE, f32 for the shifted/exp/accumulate path:
    #   loss = m + log(sum(exp(x - m))) - x[tgt]
    m32 = m.astype(jnp.float32)
    shifted = logits.astype(jnp.float32) - m32
    sumexp = jnp.sum(jnp.exp(shifted), axis=-1, keepdims=True)
    loss = m32 + jnp.log(sumexp) - tgt_logit.astype(jnp.float32)       # (TB, 1)

    # +1 retain / -1 forget; negative_classes is static -> unrolled compares.
    if negative_classes:
        neg = tgt == jnp.int32(negative_classes[0])
        for cls in negative_classes[1:]:
            neg = neg | (tgt == jnp.int32(cls))
        sign = jnp.where(neg, jnp.float32(-1.0), jnp.float32(1.0))
    else:
        sign = jnp.ones_like(loss)

    partial = jnp.sum(loss * sign)                    # scalar partial sum
    out_ref[...] = jnp.broadcast_to(partial, out_ref.shape)


def _signed_ce_sum_ref(logits, targets, negative_classes):
    """Plain-JAX signed CE sum (used for the sub-tile remainder + as reference)."""
    logits = logits.astype(jnp.float32)
    targets = targets.astype(jnp.int32)
    lse = jax.scipy.special.logsumexp(logits, axis=-1)
    tgt_logit = jnp.take_along_axis(logits, targets[:, None], axis=-1)[:, 0]
    loss = lse - tgt_logit
    neg = jnp.zeros(targets.shape, dtype=bool)
    for c in negative_classes:
        neg = neg | (targets == jnp.int32(c))
    return jnp.sum(loss * jnp.where(neg, -1.0, 1.0))


def neg_grad_plus_loss(logits, targets, negative_classes=(), block_b=None):
    """logits: (B, C) float (f32/bf16), targets: (B,) int -> scalar f32 mean."""
    B, C = logits.shape
    negative_classes = tuple(int(c) for c in negative_classes)
    itemsize = jnp.dtype(logits.dtype).itemsize
    row_align = max(8, 32 // itemsize)        # 8 for f32, 16 for bf16 packing

    # ---- tile-size heuristic (bytes-based, VMEM-budget aware) ----
    if B <= row_align:
        tb = B                                # single full-array block
    else:
        if block_b is not None:
            tb = int(block_b)
        else:
            tile_rows = max(1, _TILE_BYTES // (C * itemsize))
            # per-row live VMEM: 2x logits (double buffer) ~= 2*C*itemsize,
            # plus +C*itemsize headroom, lane-padded (tb,1) int32 targets x2
            # buffers ~= 1024 B, f32 temporaries ~= 3*4*C.
            per_row = 3 * C * itemsize + 12 * C + 1024
            tb = max(1, min(tile_rows, _VMEM_BUDGET // per_row))
        tb = min(tb, B)
        if B >= 2 * row_align:                # keep >= 2 tiles for v7x's 2 TCs
            tb = min(tb, max(row_align, _round_down(B // 2, row_align)))
        tb = max(row_align, _round_down(tb, row_align))
        tb = min(tb, _round_down(B, row_align))

    nb = B // tb                              # full in-bounds tiles (>= 1)
    rem = B - nb * tb                         # remainder rows handled by jnp

    targets = targets.astype(jnp.int32)
    targets2d = targets.reshape(B, 1)

    kernel = functools.partial(_neg_grad_plus_kernel,
                               negative_classes=negative_classes)

    cost = pl.CostEstimate(
        flops=int(6 * nb * tb * C),
        transcendentals=int(nb * tb * C),
        bytes_accessed=int(nb * tb * C * itemsize + nb * tb * 4 + nb * 8 * 128 * 4),
    )

    partials = pl.pallas_call(
        kernel,
        out_shape=jax.ShapeDtypeStruct((nb, 8, 128), jnp.float32),
        grid=(nb,),
        in_specs=[
            pl.BlockSpec((tb, C), lambda i: (i, 0)),
            pl.BlockSpec((tb, 1), lambda i: (i, 0)),
        ],
        out_specs=pl.BlockSpec((1, 8, 128), lambda i: (i, 0, 0)),
        compiler_params=pltpu.CompilerParams(
            dimension_semantics=("parallel",),
            vmem_limit_bytes=_VMEM_LIMIT,
        ),
        cost_estimate=cost,
    )(logits, targets2d)

    total = jnp.sum(partials[:, 0, 0])

    if rem > 0:
        # Tiny tail (< tb rows): plain jnp, avoids padding/copying the whole
        # logits array just to make B divisible by the tile.
        total = total + _signed_ce_sum_ref(
            logits[nb * tb:], targets[nb * tb:], negative_classes)

    return total / jnp.float32(B)


if __name__ == "__main__":
    key = jax.random.PRNGKey(0)
    k1, k2, k3, k4, k5, k6 = jax.random.split(key, 6)

    # Case 1: small f32 problem, single full block.
    B1, C1, neg1 = 8, 32, [1, 3, 7]
    logits1 = jax.random.normal(k1, (B1, C1), dtype=jnp.float32)
    targets1 = jax.random.randint(k2, (B1,), 0, C1, dtype=jnp.int32)
    out1 = jax.block_until_ready(neg_grad_plus_loss(logits1, targets1, neg1))
    ref1 = _signed_ce_sum_ref(logits1, targets1, neg1) / B1
    assert jnp.allclose(out1, ref1, atol=1e-5, rtol=1e-5), (out1, ref1)

    # Case 2: bf16 logits, batch not a multiple of the aligned tile ->
    # one in-bounds kernel tile (16 rows) + jnp tail over the 4 remainder rows.
    B2, C2, neg2 = 20, 160, [0, 5]
    logits2 = jax.random.normal(k3, (B2, C2), dtype=jnp.float32).astype(jnp.bfloat16)
    targets2 = jax.random.randint(k4, (B2,), 0, C2, dtype=jnp.int32)
    out2 = jax.block_until_ready(
        neg_grad_plus_loss(logits2, targets2, neg2, block_b=8))
    ref2 = _signed_ce_sum_ref(logits2, targets2, neg2) / B2
    assert jnp.allclose(out2, ref2, atol=1e-4, rtol=1e-4), (out2, ref2)

    # Case 3: multiple kernel tiles (per-tile partial sums, parallel grid axis).
    B3, C3, neg3 = 64, 128, [2]
    logits3 = jax.random.normal(k5, (B3, C3), dtype=jnp.float32)
    targets3 = jax.random.randint(k6, (B3,), 0, C3, dtype=jnp.int32)
    out3 = jax.block_until_ready(neg_grad_plus_loss(logits3, targets3, neg3))
    ref3 = _signed_ce_sum_ref(logits3, targets3, neg3) / B3
    assert jnp.allclose(out3, ref3, atol=1e-5, rtol=1e-5), (out3, ref3)

    print("KERNEL_OK")
</pallas_src>

<mosaic_0001>
module attributes {stable_mosaic.version = 11 : i64} {
  func.func @_neg_grad_plus_kernel(%arg0: i32, %arg1: memref<8x32xf32, #tpu.memory_space<vmem>>, %arg2: memref<8x1xi32, #tpu.memory_space<vmem>>, %arg3: memref<1x8x128xf32, #tpu.memory_space<vmem>>) attributes {dimension_semantics = [#tpu.dimension_semantics<parallel>], iteration_bounds = array<i64: 1>, scalar_prefetch = 0 : i64, scratch_operands = 0 : i64, tpu.core_type = #tpu.core_type<tc>, window_params = [{transform_indices = @transform_0, window_bounds = array<i64: 8, 32>}, {transform_indices = @transform_1, window_bounds = array<i64: 8, 1>}, {transform_indices = @transform_2, window_bounds = array<i64: 1, 8, 128>}]} {
    %c0 = arith.constant 0 : index
    %c0_0 = arith.constant 0 : index
    %0 = vector.load %arg1[%c0, %c0_0] : memref<8x32xf32, #tpu.memory_space<vmem>>, vector<8x32xf32>
    %c0_1 = arith.constant 0 : index
    %c0_2 = arith.constant 0 : index
    %1 = vector.load %arg2[%c0_1, %c0_2] : memref<8x1xi32, #tpu.memory_space<vmem>>, vector<8x1xi32>
    %2 = tpu.iota {dimensions = array<i32: 1>} : vector<1x32xi32>
    %3 = vector.broadcast %2 : vector<1x32xi32> to vector<8x32xi32>
    %4 = vector.broadcast %1 : vector<8x1xi32> to vector<8x32xi32>
    %5 = arith.cmpi eq, %3, %4 : vector<8x32xi32>
    %cst = arith.constant dense<0xFF800000> : vector<8xf32>
    %6 = vector.multi_reduction <maximumf>, %0, %cst [1] : vector<8x32xf32> to vector<8xf32>
    %7 = vector.shape_cast %6 : vector<8xf32> to vector<8x1xf32>
    %cst_3 = arith.constant 0.000000e+00 : f32
    %8 = vector.broadcast %cst_3 : f32 to vector<8x32xf32>
    %9 = arith.select %5, %0, %8 : vector<8x32xi1>, vector<8x32xf32>
    %cst_4 = arith.constant dense<0.000000e+00> : vector<8xf32>
    %10 = vector.multi_reduction <add>, %9, %cst_4 [1] : vector<8x32xf32> to vector<8xf32>
    %11 = vector.shape_cast %10 : vector<8xf32> to vector<8x1xf32>
    %12 = vector.broadcast %7 : vector<8x1xf32> to vector<8x32xf32>
    %13 = arith.subf %0, %12 : vector<8x32xf32>
    %14 = math.exp %13 : vector<8x32xf32>
    %cst_5 = arith.constant dense<0.000000e+00> : vector<8xf32>
    %15 = vector.multi_reduction <add>, %14, %cst_5 [1] : vector<8x32xf32> to vector<8xf32>
    %16 = vector.shape_cast %15 : vector<8xf32> to vector<8x1xf32>
    %17 = math.log %16 : vector<8x1xf32>
    %18 = arith.addf %7, %17 : vector<8x1xf32>
    %19 = arith.subf %18, %11 : vector<8x1xf32>
    %c1_i32 = arith.constant 1 : i32
    %20 = vector.broadcast %c1_i32 : i32 to vector<8x1xi32>
    %21 = arith.cmpi eq, %1, %20 : vector<8x1xi32>
    %c3_i32 = arith.constant 3 : i32
    %22 = vector.broadcast %c3_i32 : i32 to vector<8x1xi32>
    %23 = arith.cmpi eq, %1, %22 : vector<8x1xi32>
    %24 = arith.ori %21, %23 : vector<8x1xi1>
    %c7_i32 = arith.constant 7 : i32
    %25 = vector.broadcast %c7_i32 : i32 to vector<8x1xi32>
    %26 = arith.cmpi eq, %1, %25 : vector<8x1xi32>
    %27 = arith.ori %24, %26 : vector<8x1xi1>
    %cst_6 = arith.constant -1.000000e+00 : f32
    %cst_7 = arith.constant 1.000000e+00 : f32
    %28 = vector.broadcast %cst_6 : f32 to vector<8x1xf32>
    %29 = vector.broadcast %cst_7 : f32 to vector<8x1xf32>
    %30 = arith.select %27, %28, %29 : vector<8x1xi1>, vector<8x1xf32>
    %31 = arith.mulf %19, %30 : vector<8x1xf32>
    %32 = vector.shape_cast %31 : vector<8x1xf32> to vector<1x8x1xf32>
    %cst_8 = arith.constant dense<0.000000e+00> : vector<1xf32>
    %33 = vector.multi_reduction <add>, %32, %cst_8 [1, 2] : vector<1x8x1xf32> to vector<1xf32>
    %34 = vector.shape_cast %33 : vector<1xf32> to vector<1x1x1xf32>
    %35 = vector.extract %34[0, 0, 0] : f32 from vector<1x1x1xf32>
    %36 = vector.broadcast %35 : f32 to vector<1x8x128xf32>
    %c0_9 = arith.constant 0 : index
    %c0_10 = arith.constant 0 : index
    %c0_11 = arith.constant 0 : index
    %37 = vector.load %arg3[%c0_9, %c0_10, %c0_11] : memref<1x8x128xf32, #tpu.memory_space<vmem>>, vector<1x8x128xf32>
    tpu.vector_store %arg3[%c0_9, %c0_10, %c0_11], %36 {strides = array<i32>} : memref<1x8x128xf32, #tpu.memory_space<vmem>>, vector<1x8x128xf32>,
    return
  }
  func.func @transform_0(%arg0: i32) -> (i32, i32) {
    %c0_i32 = arith.constant 0 : i32
    %c0_i32_0 = arith.constant 0 : i32
    return %arg0, %c0_i32 : i32, i32
  }
  func.func @transform_1(%arg0: i32) -> (i32, i32) {
    %c0_i32 = arith.constant 0 : i32
    %c0_i32_0 = arith.constant 0 : i32
    return %arg0, %c0_i32 : i32, i32
  }
  func.func @transform_2(%arg0: i32) -> (i32, i32, i32) {
    %c0_i32 = arith.constant 0 : i32
    %c0_i32_0 = arith.constant 0 : i32
    %c0_i32_1 = arith.constant 0 : i32
    return %arg0, %c0_i32, %c0_i32_0 : i32, i32, i32
  }
}

</mosaic_0001>

<bundles_post_ra>
// kernel: tpu_custom_call.1
= control target key start
LH: loop header
LB: loop body
LE: loop exit
PB: predicated region body
PF: predicated region fallthrough
CT: control target
= control target key end

     0   :  { %vm20_vm0 = vcmask 261120   ;;  %s145_s0 = inlined_call_operand.vmem [shape: f32[8,32], index: 0, kind: input, shape index: {}]   ;;  %s146_s1 = inlined_call_operand.vmem [shape: s32[8,1], index: 1, kind: input, shape index: {}]   ;;  %s147_s2 = inlined_call_operand.hbm [shape: f32[1,8,128], index: 2, kind: output, shape index: {}]  }
   0x1   :  { %v12_v0 = vld [vmem:[%s145_s0] sm:$0xff] }
   0x2   :  { %7 = vsyncpa [#allocation3], 0  ;;  %v21_v1 = vsel %vm20_vm0, %v12_v0, -inf  ;;  %v106_v2 = vmov 0   ;;  %v13_v3 = vld [vmem:[%s146_s1] sm:$0xff]  ;;  %v14_v7 = vlaneseq  ;;  %v107_v19 = vmov 1.0  }
   0x3   :  { %77 = vset.pattern.permute.xlu0 %v106_v2  ;;  %vm38_vm2 = vcmp.eq.s32.totalorder %v13_v3, 1  ;;  %vm39_vm3 = vcmp.eq.s32.totalorder %v13_v3, 3  ;;  %vm41_vm5 = vcmp.eq.s32.totalorder %v13_v3, 7  ;;  %vm45_vm7 = vcmask 7168   ;;  %s108_s0 = smov [#allocation2]  }
   0x4   :  { %22 = vmax.xlane.f32.xlu0 %v21_v1  ;;  %v15_v8 = vand.u32 127, %v14_v7  ;;  %vm40_vm4 = vmor %vm38_vm2, %vm39_vm3  ;;  %s64_s1 = sshll.u32 %s108_s0, 4  ;;  %s65_s1 = int_to_ptr.vmem [resolvable:$true] %s64_s1 }
   0x5   :  { %vm42_vm6 = vmor %vm40_vm4, %vm41_vm5  ;;  %s82_s14 = scalar_lea.vmem %s65_s1, 128  ;;  %p87_p1 = scmp.lt.s32.totalorder %s65_s1, %s65_s1 }
   0x6   :  { %v43_v20 = vsel %vm42_vm6, -1.0, %v107_v19  ;;  %p83_p0 = scmp.ne.s32.totalorder %s65_s1, %s82_s14  ;;  %p88_p2 = scmp.lt.s32.totalorder %s82_s14, %s82_s14 }
   0x8   :  { %p89_p3 = por %p88_p2, %p87_p1 }
   0xa   :  { %p90_p4 = pnand %p89_p3, %p83_p0 }
  0x1a   :  { %17 = vperm.xlu0 %77, %v13_v3  }
  0x91   :  { %v23_v4 = vpop.xlane.xlu0 %22 }
  0x92   :  { %v28_v5 = vsub.f32 %v12_v0, %v23_v4 }
  0x94   :  { %v29_v6 = vmul.f32 1.442695, %v28_v5 }
  0x96   :  { %78 = vpow2.f32 %v29_v6 }
  0x99   :  { %v18_v9 = vpop.permute.xlu0 %17 }
  0x9a   :  { %vm19_vm1 = vcmp.eq.s32.totalorder %v15_v8, %v18_v9 }
  0x9b   :  { %v24_v11 = vsel %vm19_vm1, %v12_v0, 0.0 }
  0x9c   :  { %v25_v13 = vsel %vm20_vm0, %v24_v11, 0.0 }
  0xa0   :  { %v79_v10 = vpop.eup %78 }
  0xa1   :  { %v31_v12 = vsel %vm20_vm0, %v79_v10, 0.0 }
  0xa2   :  { %32 = vadd.xlane.f32.xlu1 %v31_v12 }
  0xa6   :  { %26 = vadd.xlane.f32.xlu1 %v25_v13 }
 0x12f   :  { %v33_v14 = vpop.xlane.xlu1 %32 }
 0x130   :  { %80 = vlog2.f32 %v33_v14 }
 0x133   :  { %v27_v17 = vpop.xlane.xlu1 %26 }
 0x13a   :  { %v81_v15 = vpop.eup %80 }
 0x13b   :  { %v35_v16 = vmul.f32 0.6931472, %v81_v15 }
 0x13d   :  { %v36_v18 = vadd.f32 %v35_v16, %v23_v4 }
 0x13f   :  { %v37_v21 = vsub.f32 %v36_v18, %v27_v17 }
 0x141   :  { %v44_v22 = vmul.f32 %v43_v20, %v37_v21 }
 0x143   :  { %v46_v23 = vsel %vm45_vm7, %v44_v22, 0.0 }
 0x144   :  { %47 = vadd.xlane.f32.xlu1 %v46_v23 }
 0x1d1   :  { %v48_v24 = vpop.xlane.xlu1 %47 }
 0x1d2   :  { %v49_v25 = vrot.slane %v48_v24, 4 }
 0x1d4   :  { %v50_v26 = vadd.f32 %v49_v25, %v48_v24 }
 0x1d6   :  { %v51_v27 = vrot.slane %v50_v26, 2 }
 0x1d8   :  { %v52_v28 = vadd.f32 %v51_v27, %v50_v26 }
 0x1da   :  { %v53_v29 = vrot.slane %v52_v28, 1 }
 0x1dc   :  { %v54_v30 = vadd.f32 %v53_v29, %v52_v28 }
 0x1de   :  { %72 = vpush %v54_v30 }
 0x20f   :  { %s73_s13 = spop %72 }
 0x210   :  { %v56_v31 = vstv %s73_s13 }
 0x211   :  { %57 = vst [vmem:[#allocation2] sm:$0xff] %v56_v31 }
 0x212   :  { %93 = shalt.err (!%p90_p4)
}
 0x213   :  { %s94_s17 = scalar_lea.hbm %s147_s2, 128 }
 0x214   :  { %p95_p5 = scmp.ne.s32.totalorder %s147_s2, %s94_s17  ;;  %p98_p6 = scmp.lt.u32.totalorder %s94_s17, %s147_s2 }
 0x216   :  { %p100_p7 = pnand %p98_p6, %p95_p5 }
 0x218   :  { %103 = shalt.err (!%p100_p7)
}
 0x219   :  { %67 = dma.vmem_to_hbm [thread:$0]  %s65_s1, 128, %s147_s2, [#allocation3]  }
 0x21a   :  { %104 = dma.done.wait [#allocation3], 128  }
 0x21b   :  { %105 = vsyncadd [#allocation3], 4294967168 }
 0x21c   :  { %71 = vsyncpa [#allocation3], 1 }

</bundles_post_ra>
